<compile_context>
chip_gen: v6e
topology: v6e:2x2x1
jax: 0.10.0
libtpu: 0.0.40
codegen_flags: <defaults>
</compile_context>

<pallas_src>
import functools

import jax
import jax.numpy as jnp
from jax.experimental import pallas as pl
from jax.experimental.pallas import tpu as pltpu


def _round_up(v, m):
    return ((v + m - 1) // m) * m


def highway_kernel(x_ref, w_ref, b_ref, o_ref, *, e, e_pad, matmul_dtype):
    x = x_ref[...]                                            # (tm, e) residual, f32
    # Single fused matmul on the MXU: columns [0:e_pad) are proj, [e_pad:2*e_pad) gate.
    y = jnp.dot(x.astype(matmul_dtype), w_ref[...],
                preferred_element_type=jnp.float32) + b_ref[...]
    proj = jnp.maximum(y[:, :e], 0.0)                         # relu(x @ Wp^T + bp)
    gate = jax.nn.sigmoid(y[:, e_pad:e_pad + e])              # sigmoid(x @ Wg^T + bg)  (EUP)
    # Highway mix: x + gate * (proj - x)  == gate*proj + (1-gate)*x, one fewer VPU op.
    o_ref[...] = (x + gate * (proj - x)).astype(o_ref.dtype)


def prepare_highway_params(w_proj, b_proj, w_gate, b_gate, *,
                           matmul_dtype=jnp.bfloat16):
    """Fuse / pre-transpose / lane-pad / cast the two Linear layers.

    PyTorch Linear layout is (out, in) with y = x @ W^T + b.  Call this ONCE
    (e.g. at parameter init) and reuse the result; re-running it every forward
    is avoidable transpose/pad/concat HBM traffic.
    """
    e_out, e_in = w_proj.shape
    assert w_proj.shape == w_gate.shape == (e_out, e_in) and e_out == e_in
    e = e_in
    ep = _round_up(e, 128)   # lane-align each Linear's output columns
    # TODO(synk): on v6e/v7x (2x256x256 MXU) padding ep to a multiple of 256 avoids
    # half-empty systolic passes; gate on pltpu.get_tpu_info() if that matters.

    def prep(w):             # (e, ep) = W^T, N lane-padded; K (=e) left unpadded
        return jnp.pad(w.T, ((0, 0), (0, ep - e)))

    w_cat = jnp.concatenate([prep(w_proj), prep(w_gate)], axis=1).astype(matmul_dtype)
    b_cat = jnp.concatenate(
        [jnp.pad(b_proj, (0, ep - e)), jnp.pad(b_gate, (0, ep - e))]
    ).reshape(1, 2 * ep).astype(jnp.float32)
    return w_cat, b_cat


def highway_apply(x, w_cat, b_cat, *, tile_m=512,
                  vmem_budget_bytes=40 * 1024 * 1024):
    """Apply the highway kernel given pre-fused params from prepare_highway_params.

    x: (b, sent_len, e_word).  Output has the same shape and dtype as x.
    """
    b, s, e = x.shape
    two_ep = w_cat.shape[1]
    ep = two_ep // 2
    assert w_cat.shape == (e, two_ep) and b_cat.shape == (1, two_ep)

    M = b * s
    x2d = x.reshape(M, e)            # contiguous reshape: no HBM copy

    # Row tile: as large as possible (fills the MXU, amortizes per-step pipeline
    # overhead), shrunk if the VMEM estimate would blow the budget.
    tile_m = max(8, _round_up(int(tile_m), 8))

    def vmem_estimate(tm):
        x_bytes = x2d.dtype.itemsize
        w_bytes = w_cat.dtype.itemsize
        return (2 * tm * e * x_bytes          # double-buffered x tiles
                + 2 * tm * e * x_bytes        # double-buffered out tiles
                + e * two_ep * w_bytes        # resident weight (single-buffered)
                + two_ep * 4                  # resident bias
                + 2 * tm * two_ep * 4)        # f32 dot result + epilogue temporaries

    if M <= tile_m:
        tm = M                                 # full-dim block: always legal
    else:
        tm = tile_m                            # multiple of 8; partial last block OK
        while tm > 8 and vmem_estimate(tm) > vmem_budget_bytes:
            tm = max(8, (tm // 2) // 8 * 8)

    grid = (pl.cdiv(M, tm),)
    vmem_limit = int(min(max(int(vmem_estimate(tm) * 1.3) + (4 << 20), 32 << 20),
                         100 << 20))

    kernel = functools.partial(highway_kernel, e=e, e_pad=ep,
                               matmul_dtype=w_cat.dtype)

    # TODO(synk): for very large e (>= ~2048 on v7x, ~4096 on v5e/v6e) add a second
    # grid axis over the 2*ep output columns (stream (e, tn) weight tiles, keep the
    # x tile resident) so weight VMEM is bounded by e*tn instead of e*2*ep.
    def build(resident_kwargs):
        return pl.pallas_call(
            kernel,
            out_shape=jax.ShapeDtypeStruct((M, e), x.dtype),
            grid_spec=pltpu.PrefetchScalarGridSpec(
                num_scalar_prefetch=0,
                grid=grid,
                in_specs=[
                    pl.BlockSpec((tm, e), lambda i: (i, 0)),      # x rows (pipelined)
                    pl.BlockSpec((e, two_ep), lambda i: (0, 0),   # [Wp^T | Wg^T] resident
                                 **resident_kwargs),
                    pl.BlockSpec((1, two_ep), lambda i: (0, 0),   # [bp | bg] resident
                                 **resident_kwargs),
                ],
                out_specs=pl.BlockSpec((tm, e), lambda i: (i, 0)),
            ),
            compiler_params=pltpu.CompilerParams(
                dimension_semantics=("parallel",),
                vmem_limit_bytes=vmem_limit),
        )

    try:
        # Constant-index resident operands: single-buffer them (they are never
        # re-fetched, so double buffering would only waste VMEM).
        out2d = build(dict(pipeline_mode=pl.Buffered(1)))(x2d, w_cat, b_cat)
    except Exception:
        # Fallback for jax versions where pipeline_mode / Buffered(1) is not
        # accepted at the top-level pallas_call: default (double) buffering.
        out2d = build({})(x2d, w_cat, b_cat)

    return out2d.reshape(b, s, e)


def highway_forward(x, w_proj, b_proj, w_gate, b_gate, *, tile_m=512,
                    matmul_dtype=jnp.bfloat16):
    """Convenience wrapper: prep params then apply.

    For repeated forwards, call prepare_highway_params once and use
    highway_apply directly (the prep is per-call HBM traffic otherwise).
    """
    w_cat, b_cat = prepare_highway_params(
        w_proj, b_proj, w_gate, b_gate, matmul_dtype=matmul_dtype)
    return highway_apply(x, w_cat, b_cat, tile_m=tile_m)


def highway_ref(x, w_proj, b_proj, w_gate, b_gate):
    x_proj = jax.nn.relu(jnp.einsum("bse,oe->bso", x, w_proj) + b_proj)
    x_gate = jax.nn.sigmoid(jnp.einsum("bse,oe->bso", x, w_gate) + b_gate)
    return x_gate * x_proj + (1.0 - x_gate) * x


def _make_params(key, e):
    kwp, kbp, kwg, kbg = jax.random.split(key, 4)
    bound = 1.0 / (e ** 0.5)
    w_proj = jax.random.uniform(kwp, (e, e), jnp.float32, -bound, bound)
    b_proj = jax.random.uniform(kbp, (e,), jnp.float32, -bound, bound)
    w_gate = jax.random.uniform(kwg, (e, e), jnp.float32, -bound, bound)
    b_gate = jax.random.uniform(kbg, (e,), jnp.float32, -bound, bound)
    return w_proj, b_proj, w_gate, b_gate


if __name__ == "__main__":
    # Small shapes consistent with the module: (b, sent_len, e_word)
    b, sent_len, e_word = 2, 8, 32
    key = jax.random.PRNGKey(0)
    kx, kparams, kx2, kparams2 = jax.random.split(key, 4)

    x = jax.random.normal(kx, (b, sent_len, e_word), dtype=jnp.float32)
    w_proj, b_proj, w_gate, b_gate = _make_params(kparams, e_word)
    ref = highway_ref(x, w_proj, b_proj, w_gate, b_gate)

    # f32 MXU-input path: tight tolerance vs reference.
    out_f32 = jax.block_until_ready(
        highway_forward(x, w_proj, b_proj, w_gate, b_gate, matmul_dtype=jnp.float32))
    assert out_f32.shape == (b, sent_len, e_word)
    assert jnp.allclose(out_f32, ref, atol=1e-5, rtol=1e-5), "f32 mismatch vs reference"

    # Default path: bf16 MXU inputs, f32 accumulate/epilogue; params prepared once
    # (hoisted prep) and applied via highway_apply.
    w_cat, b_cat = prepare_highway_params(w_proj, b_proj, w_gate, b_gate)  # bf16 default
    out_bf16 = jax.block_until_ready(highway_apply(x, w_cat, b_cat))
    assert jnp.allclose(out_bf16, ref, atol=5e-2, rtol=5e-2), "bf16 mismatch vs reference"

    # Odd shapes: e not a multiple of 128, M not a multiple of 8 (full-dim blocks).
    b2, s2, e2 = 3, 5, 40
    x2 = jax.random.normal(kx2, (b2, s2, e2), dtype=jnp.float32)
    p2 = _make_params(kparams2, e2)
    ref2 = highway_ref(x2, *p2)
    out2 = jax.block_until_ready(highway_forward(x2, *p2, matmul_dtype=jnp.float32))
    assert out2.shape == (b2, s2, e2)
    assert jnp.allclose(out2, ref2, atol=1e-5, rtol=1e-5), "odd-shape mismatch vs reference"

    # Partial last row block (grid = cdiv(M, tm) with M=15, tm=8): exercises the
    # no-wrapper-padding path where Pallas clips the out-of-range output rows.
    out3 = jax.block_until_ready(
        highway_forward(x2, *p2, tile_m=8, matmul_dtype=jnp.float32))
    assert jnp.allclose(out3, ref2, atol=1e-5, rtol=1e-5), "partial-block mismatch vs reference"

    print("KERNEL_OK")
</pallas_src>

<mosaic_0001>
module attributes {stable_mosaic.version = 11 : i64} {
  func.func @highway_kernel(%arg0: i32, %arg1: memref<16x32xf32, #tpu.memory_space<vmem>>, %arg2: memref<32x256xf32, #tpu.memory_space<vmem>>, %arg3: memref<1x256xf32, #tpu.memory_space<vmem>>, %arg4: memref<16x32xf32, #tpu.memory_space<vmem>>) attributes {dimension_semantics = [#tpu.dimension_semantics<parallel>], iteration_bounds = array<i64: 1>, scalar_prefetch = 0 : i64, scratch_operands = 0 : i64, tpu.core_type = #tpu.core_type<tc>, window_params = [{transform_indices = @transform_0, window_bounds = array<i64: 16, 32>}, {pipeline_mode = #tpu.pipeline_mode<synchronous>, transform_indices = @transform_1, window_bounds = array<i64: 32, 256>}, {pipeline_mode = #tpu.pipeline_mode<synchronous>, transform_indices = @transform_2, window_bounds = array<i64: 1, 256>}, {transform_indices = @transform_3, window_bounds = array<i64: 16, 32>}]} {
    %c0 = arith.constant 0 : index
    %c0_0 = arith.constant 0 : index
    %0 = vector.load %arg1[%c0, %c0_0] : memref<16x32xf32, #tpu.memory_space<vmem>>, vector<16x32xf32>
    %c0_1 = arith.constant 0 : index
    %c0_2 = arith.constant 0 : index
    %1 = vector.load %arg2[%c0_1, %c0_2] : memref<32x256xf32, #tpu.memory_space<vmem>>, vector<32x256xf32>
    %cst = arith.constant dense<0.000000e+00> : vector<16x256xf32>
    %2 = tpu.matmul %0, %1, %cst {dimension_numbers = #tpu.dot_dimension_numbers<[1], [0], [0], [1], [0, 0, 1, 1], [], []>} : vector<16x32xf32>, vector<32x256xf32>, vector<16x256xf32> -> vector<16x256xf32>
    %c0_3 = arith.constant 0 : index
    %c0_4 = arith.constant 0 : index
    %3 = vector.load %arg3[%c0_3, %c0_4] : memref<1x256xf32, #tpu.memory_space<vmem>>, vector<1x256xf32>
    %4 = vector.broadcast %3 : vector<1x256xf32> to vector<16x256xf32>
    %5 = arith.addf %2, %4 : vector<16x256xf32>
    %6 = vector.extract_strided_slice %5 {offsets = [0, 0], sizes = [16, 32], strides = [1, 1]} : vector<16x256xf32> to vector<16x32xf32>
    %cst_5 = arith.constant 0.000000e+00 : f32
    %7 = vector.broadcast %cst_5 : f32 to vector<16x32xf32>
    %8 = arith.maximumf %6, %7 : vector<16x32xf32>
    %9 = vector.extract_strided_slice %5 {offsets = [0, 128], sizes = [16, 32], strides = [1, 1]} : vector<16x256xf32> to vector<16x32xf32>
    %10 = arith.negf %9 : vector<16x32xf32>
    %11 = math.exp %10 : vector<16x32xf32>
    %cst_6 = arith.constant 1.000000e+00 : f32
    %12 = vector.broadcast %cst_6 : f32 to vector<16x32xf32>
    %13 = arith.addf %12, %11 : vector<16x32xf32>
    %14 = arith.divf %12, %13 : vector<16x32xf32>
    %15 = arith.subf %8, %0 : vector<16x32xf32>
    %16 = arith.mulf %14, %15 : vector<16x32xf32>
    %17 = arith.addf %0, %16 : vector<16x32xf32>
    %c0_7 = arith.constant 0 : index
    %c0_8 = arith.constant 0 : index
    %18 = vector.load %arg4[%c0_7, %c0_8] : memref<16x32xf32, #tpu.memory_space<vmem>>, vector<16x32xf32>
    tpu.vector_store %arg4[%c0_7, %c0_8], %17 {strides = array<i32>} : memref<16x32xf32, #tpu.memory_space<vmem>>, vector<16x32xf32>,
    return
  }
  func.func @transform_0(%arg0: i32) -> (i32, i32) {
    %c0_i32 = arith.constant 0 : i32
    %c0_i32_0 = arith.constant 0 : i32
    return %arg0, %c0_i32 : i32, i32
  }
  func.func @transform_1(%arg0: i32) -> (i32, i32) {
    %c0_i32 = arith.constant 0 : i32
    %c0_i32_0 = arith.constant 0 : i32
    %c0_i32_1 = arith.constant 0 : i32
    return %c0_i32, %c0_i32_0 : i32, i32
  }
  func.func @transform_2(%arg0: i32) -> (i32, i32) {
    %c0_i32 = arith.constant 0 : i32
    %c0_i32_0 = arith.constant 0 : i32
    %c0_i32_1 = arith.constant 0 : i32
    return %c0_i32, %c0_i32_0 : i32, i32
  }
  func.func @transform_3(%arg0: i32) -> (i32, i32) {
    %c0_i32 = arith.constant 0 : i32
    %c0_i32_0 = arith.constant 0 : i32
    return %arg0, %c0_i32 : i32, i32
  }
}

module attributes {stable_mosaic.version = 11 : i64} {
  func.func @highway_kernel(%arg0: i32, %arg1: memref<16x32xf32, #tpu.memory_space<vmem>>, %arg2: memref<32x256xf32, #tpu.memory_space<vmem>>, %arg3: memref<1x256xf32, #tpu.memory_space<vmem>>, %arg4: memref<16x32xf32, #tpu.memory_space<vmem>>) attributes {dimension_semantics = [#tpu.dimension_semantics<parallel>], iteration_bounds = array<i64: 1>, scalar_prefetch = 0 : i64, scratch_operands = 0 : i64, tpu.core_type = #tpu.core_type<tc>, window_params = [{transform_indices = @transform_0, window_bounds = array<i64: 16, 32>}, {pipeline_mode = #tpu.pipeline_mode<synchronous>, transform_indices = @transform_1, window_bounds = array<i64: 32, 256>}, {pipeline_mode = #tpu.pipeline_mode<synchronous>, transform_indices = @transform_2, window_bounds = array<i64: 1, 256>}, {transform_indices = @transform_3, window_bounds = array<i64: 16, 32>}]} {
    %c0 = arith.constant 0 : index
    %c0_0 = arith.constant 0 : index
    %0 = vector.load %arg1[%c0, %c0_0] : memref<16x32xf32, #tpu.memory_space<vmem>>, vector<16x32xf32>
    %c0_1 = arith.constant 0 : index
    %c0_2 = arith.constant 0 : index
    %1 = vector.load %arg2[%c0_1, %c0_2] : memref<32x256xf32, #tpu.memory_space<vmem>>, vector<32x256xf32>
    %cst = arith.constant dense<0.000000e+00> : vector<16x256xf32>
    %2 = tpu.matmul %0, %1, %cst {dimension_numbers = #tpu.dot_dimension_numbers<[1], [0], [0], [1], [0, 0, 1, 1], [], []>} : vector<16x32xf32>, vector<32x256xf32>, vector<16x256xf32> -> vector<16x256xf32>
    %c0_3 = arith.constant 0 : index
    %c0_4 = arith.constant 0 : index
    %3 = vector.load %arg3[%c0_3, %c0_4] : memref<1x256xf32, #tpu.memory_space<vmem>>, vector<1x256xf32>
    %4 = vector.broadcast %3 : vector<1x256xf32> to vector<16x256xf32>
    %5 = arith.addf %2, %4 : vector<16x256xf32>
    %6 = vector.extract_strided_slice %5 {offsets = [0, 0], sizes = [16, 32], strides = [1, 1]} : vector<16x256xf32> to vector<16x32xf32>
    %cst_5 = arith.constant 0.000000e+00 : f32
    %7 = vector.broadcast %cst_5 : f32 to vector<16x32xf32>
    %8 = arith.maximumf %6, %7 : vector<16x32xf32>
    %9 = vector.extract_strided_slice %5 {offsets = [0, 128], sizes = [16, 32], strides = [1, 1]} : vector<16x256xf32> to vector<16x32xf32>
    %10 = arith.negf %9 : vector<16x32xf32>
    %11 = math.exp %10 : vector<16x32xf32>
    %cst_6 = arith.constant 1.000000e+00 : f32
    %12 = vector.broadcast %cst_6 : f32 to vector<16x32xf32>
    %13 = arith.addf %12, %11 : vector<16x32xf32>
    %14 = arith.divf %12, %13 : vector<16x32xf32>
    %15 = arith.subf %8, %0 : vector<16x32xf32>
    %16 = arith.mulf %14, %15 : vector<16x32xf32>
    %17 = arith.addf %0, %16 : vector<16x32xf32>
    %c0_7 = arith.constant 0 : index
    %c0_8 = arith.constant 0 : index
    %18 = vector.load %arg4[%c0_7, %c0_8] : memref<16x32xf32, #tpu.memory_space<vmem>>, vector<16x32xf32>
    tpu.vector_store %arg4[%c0_7, %c0_8], %17 {strides = array<i32>} : memref<16x32xf32, #tpu.memory_space<vmem>>, vector<16x32xf32>,
    return
  }
  func.func @transform_0(%arg0: i32) -> (i32, i32) {
    %c0_i32 = arith.constant 0 : i32
    %c0_i32_0 = arith.constant 0 : i32
    return %arg0, %c0_i32 : i32, i32
  }
  func.func @transform_1(%arg0: i32) -> (i32, i32) {
    %c0_i32 = arith.constant 0 : i32
    %c0_i32_0 = arith.constant 0 : i32
    %c0_i32_1 = arith.constant 0 : i32
    return %c0_i32, %c0_i32_0 : i32, i32
  }
  func.func @transform_2(%arg0: i32) -> (i32, i32) {
    %c0_i32 = arith.constant 0 : i32
    %c0_i32_0 = arith.constant 0 : i32
    %c0_i32_1 = arith.constant 0 : i32
    return %c0_i32, %c0_i32_0 : i32, i32
  }
  func.func @transform_3(%arg0: i32) -> (i32, i32) {
    %c0_i32 = arith.constant 0 : i32
    %c0_i32_0 = arith.constant 0 : i32
    return %arg0, %c0_i32 : i32, i32
  }
}

</mosaic_0001>

<bundles_post_ra>
// kernel: tpu_custom_call.1
= control target key start
LH: loop header
LB: loop body
LE: loop exit
PB: predicated region body
PF: predicated region fallthrough
CT: control target
= control target key end

     0   :  { %8 = vsyncpa [#allocation3], 0  ;;  %s333_s0 = inlined_call_operand.hbm [shape: f32[16,32], index: 0, kind: input, shape index: {}]   ;;  %s334_s1 = inlined_call_operand.hbm [shape: f32[32,256], index: 1, kind: input, shape index: {}]   ;;  %s335_s2 = inlined_call_operand.vmem [shape: f32[1,256], index: 2, kind: input, shape index: {}]   ;;  %s336_s3 = inlined_call_operand.hbm [shape: f32[16,32], index: 3, kind: output, shape index: {}]  }
   0x1   :  { %9 = vsyncpa [#allocation6], 0 }
   0x2   :  { %10 = vsyncpa [#allocation4], 0  ;;  %s283_s12 = smov [#allocation2]  }
   0x3   :  { %s16_s13 = sshll.u32 %s283_s12, 4  ;;  %s17_s13 = int_to_ptr.vmem [resolvable:$true] %s16_s13 }
   0x4   :  { %s225_s14 = scalar_lea.vmem %s17_s13, 256  ;;  %p230_p1 = scmp.lt.s32.totalorder %s17_s13, %s17_s13 }
   0x5   :  { %p226_p0 = scmp.ne.s32.totalorder %s17_s13, %s225_s14  ;;  %p231_p2 = scmp.lt.s32.totalorder %s225_s14, %s225_s14 }
   0x7   :  { %p232_p3 = por %p231_p2, %p230_p1 }
   0x9   :  { %p233_p4 = pnand %p232_p3, %p226_p0 }
   0xb   :  { %236 = shalt.err (!%p233_p4)
}
   0xc   :  { %s284_s15 = smov 128   ;;  %s285_s16 = smov 8  }
   0xd   :  { %22 = dma.hbm_to_vmem [thread:$0]  %s333_s0, 256, %s17_s13, [#allocation3], %s284_s15, %s284_s15, %s285_s16  }
   0xe   :  { %s286_s19 = smov [#allocation5]  }
   0xf   :  { %s28_s20 = sshll.u32 %s286_s19, 4  ;;  %s29_s20 = int_to_ptr.vmem [resolvable:$true] %s28_s20 }
  0x10   :  { %s245_s21 = scalar_lea.vmem %s29_s20, 1024  ;;  %p250_p6 = scmp.lt.s32.totalorder %s29_s20, %s29_s20 }
  0x11   :  { %p246_p5 = scmp.ne.s32.totalorder %s29_s20, %s245_s21  ;;  %p251_p7 = scmp.lt.s32.totalorder %s245_s21, %s245_s21 }
  0x13   :  { %p252_p8 = por %p251_p7, %p250_p6 }
  0x15   :  { %p253_p9 = pnand %p252_p8, %p246_p5 }
  0x17   :  { %256 = shalt.err (!%p253_p9)
}
  0x18   :  { %s287_s22 = smov 256   ;;  %s288_s23 = smov 16  }
  0x19   :  { %34 = dma.hbm_to_vmem [thread:$0]  %s334_s1, 1024, %s29_s20, [#allocation6], %s287_s22, %s287_s22, %s288_s23  }
  0x1a   :  { %277 = dma.done.wait [#allocation3], 256  }
  0x1b   :  { %278 = vsyncadd [#allocation3], 4294967040 }
  0x1c   :  { %279 = dma.done.wait [#allocation6], 1024  }
  0x1d   :  { %280 = vsyncadd [#allocation6], 4294966272  ;;  %v289_v0 = vmov 0.0   ;;  %v52_v1 = vld [vmem:[#allocation5 + $0x38] sm:$0xff]  ;;  %v51_v2 = vld [vmem:[#allocation5 + $0x30] sm:$0xff]  ;;  %vm65_vm0 = vcmask 261120   ;;  %v55_v11 = vlaneseq }
  0x1e   :  { %136 = vmatprep.mubr.f32.mxu0 %v289_v0  ;;  %142 = vmatprep.mubr.f32.mxu1 %v289_v0  ;;  %v50_v3 = vld [vmem:[#allocation5 + $0x28] sm:$0xff]  ;;  %v49_v4 = vld [vmem:[#allocation5 + $0x20] sm:$0xff]  ;;  %v48_v5 = vld [vmem:[#allocation5 + $0x18] sm:$0xff] }
  0x1f   :  { %96 = vmatprep.subr.mxu0 %v52_v1  ;;  %193 = vmatprep.subr.mxu1 %v52_v1  ;;  %v47_v6 = vld [vmem:[#allocation5 + $0x10] sm:$0xff]  ;;  %v46_v7 = vld [vmem:[#allocation5 + $0x8] sm:$0xff]  ;;  %v45_v8 = vld [vmem:[#allocation5] sm:$0xff]  ;;  %v56_v12 = vshrl.u32 %v55_v11, 7 }
  0x20   :  { %97 = vmatpush1.msra.mxu0 %v51_v2  ;;  %197 = vmatpush1.msra.mxu1 %v51_v2  ;;  %v43_v9 = vld [vmem:[#allocation2] sm:$0xff]  ;;  %v44_v10 = vld [vmem:[#allocation2 + $0x8] sm:$0xff] }
  0x21   :  { %98 = vmatprep.subr.mxu0 %v50_v3  ;;  %194 = vmatprep.subr.mxu1 %v50_v3  ;;  %v61_v13 = vsub.s32 1, %v56_v12  ;;  %v53_v14 = vld [vmem:[%s335_s2] sm:$0x3]  ;;  %v57_v24 = vsub.s32 0, %v56_v12  ;;  %s290_s2 = smov [#allocation7]  }
  0x22   :  { %99 = vmatpush1.msra.mxu0 %v49_v4  ;;  %198 = vmatpush1.msra.mxu1 %v49_v4  ;;  %s176_s26 = sshll.u32 %s290_s2, 4  ;;  %s177_s26 = int_to_ptr.vmem [resolvable:$true] %s176_s26 }
  0x23   :  { %100 = vmatprep.subr.mxu0 %v48_v5  ;;  %195 = vmatprep.subr.mxu1 %v48_v5  ;;  %v62_v15 = vrot.slane %v53_v14, %v61_v13  ;;  %v58_v29 = vrot.slane %v53_v14, %v57_v24  ;;  %s257_s27 = scalar_lea.vmem %s177_s26, 256  ;;  %p262_p11 = scmp.lt.s32.totalorder %s177_s26, %s177_s26 }
  0x24   :  { %101 = vmatpush1.msra.mxu0 %v47_v6  ;;  %199 = vmatpush1.msra.mxu1 %v47_v6  ;;  %p258_p10 = scmp.ne.s32.totalorder %s177_s26, %s257_s27  ;;  %p263_p12 = scmp.lt.s32.totalorder %s257_s27, %s257_s27 }
  0x25   :  { %102 = vmatprep.subr.mxu0 %v46_v7  ;;  %196 = vmatprep.subr.mxu1 %v46_v7 }
  0x26   :  { %103 = vmatpush1.msra.mxu0 %v45_v8  ;;  %200 = vmatpush1.msra.mxu1 %v45_v8  ;;  %p264_p13 = por %p263_p12, %p262_p11 }
  0x27   :  { %189 = vmatmul.mubr.msk.f32.vlgmr.msra.gmra.mxu0 %vm65_vm0, %v43_v9  ;;  %190 = vmatmul.mubr.msk.f32.vlgmr.msra.gmra.mxu1 %vm65_vm0, %v44_v10 }
  0x28   :  { %p265_p0 = pnand %p264_p13, %p258_p10 }
  0xe7   :  { %v138_v16 = vpop.f32.mrf.mxu0  ;;  %v144_v17 = vpop.f32.mrf.mxu1 }
  0xe8   :  { %v139_v30 = vadd.f32 %v138_v16, %v58_v29  ;;  %v145_v31 = vadd.f32 %v144_v17, %v58_v29 }
  0xe9   :  { %v140_v18 = vpop.f32.mrf.mxu0  ;;  %v146_v19 = vpop.f32.mrf.mxu1 }
  0xea   :  { %v141_v20 = vadd.f32 %v140_v18, %v62_v15  ;;  %v147_v21 = vadd.f32 %v146_v19, %v62_v15  ;;  %v149_v32 = vmax.f32 %v139_v30, 0.0  ;;  %v150_v33 = vmax.f32 %v145_v31, 0.0 }
  0xec   :  { %v191_v22 = vmul.f32 -1.442695, %v141_v20  ;;  %v192_v23 = vmul.f32 -1.442695, %v147_v21  ;;  %v163_v34 = vsub.f32 %v149_v32, %v43_v9  ;;  %v164_v36 = vsub.f32 %v150_v33, %v44_v10 }
  0xee   :  { %209 = vpow2.f32 %v191_v22 }
  0xef   :  { %211 = vpow2.f32 %v192_v23 }
  0xfb   :  { %v210_v25 = vpop.eup %209 }
  0xfc   :  { %v212_v26 = vpop.eup %211  ;;  %v157_v27 = vadd.f32 1.0, %v210_v25 }
  0xfd   :  { %v158_v28 = vadd.f32 1.0, %v212_v26 }
  0xfe   :  { %213 = vrcp.f32 %v157_v27 }
  0xff   :  { %215 = vrcp.f32 %v158_v28 }
 0x10b   :  { %v214_v35 = vpop.eup %213 }
 0x10c   :  { %v216_v37 = vpop.eup %215  ;;  %v165_v38 = vmul.f32 %v214_v35, %v163_v34 }
 0x10d   :  { %v166_v39 = vmul.f32 %v216_v37, %v164_v36 }
 0x10e   :  { %v167_v40 = vadd.f32 %v165_v38, %v43_v9 }
 0x10f   :  { %v168_v41 = vadd.f32 %v166_v39, %v44_v10 }
 0x110   :  { %169 = vst.msk [vmem:[#allocation7] sm:$0xff] %vm65_vm0, %v167_v40 }
 0x111   :  { %170 = vst.msk [vmem:[#allocation7 + $0x8] sm:$0xff] %vm65_vm0, %v168_v41 }
 0x112   :  { %268 = shalt.err (!%p265_p0)
}
 0x113   :  { %182 = dma.vmem_to_hbm [thread:$0]  %s177_s26, 256, %s336_s3, [#allocation4], %s284_s15, %s284_s15, %s285_s16  }
 0x114   :  { %281 = dma.done.wait [#allocation4], 256  }
 0x115   :  { %282 = vsyncadd [#allocation4], 4294967040 }
 0x116   :  { %186 = vsyncpa [#allocation3], 1 }
 0x117   :  { %187 = vsyncpa [#allocation6], 1 }
 0x118   :  { %188 = vsyncpa [#allocation4], 1 }

// kernel: tpu_custom_call.1
= control target key start
LH: loop header
LB: loop body
LE: loop exit
PB: predicated region body
PF: predicated region fallthrough
CT: control target
= control target key end

     0   :  { %8 = vsyncpa [#allocation3], 0  ;;  %s333_s0 = inlined_call_operand.hbm [shape: f32[16,32], index: 0, kind: input, shape index: {}]   ;;  %s334_s1 = inlined_call_operand.hbm [shape: f32[32,256], index: 1, kind: input, shape index: {}]   ;;  %s335_s2 = inlined_call_operand.vmem [shape: f32[1,256], index: 2, kind: input, shape index: {}]   ;;  %s336_s3 = inlined_call_operand.hbm [shape: f32[16,32], index: 3, kind: output, shape index: {}]  }
   0x1   :  { %9 = vsyncpa [#allocation6], 0 }
   0x2   :  { %10 = vsyncpa [#allocation4], 0  ;;  %s283_s12 = smov [#allocation2]  }
   0x3   :  { %s16_s13 = sshll.u32 %s283_s12, 4  ;;  %s17_s13 = int_to_ptr.vmem [resolvable:$true] %s16_s13 }
   0x4   :  { %s225_s14 = scalar_lea.vmem %s17_s13, 256  ;;  %p230_p1 = scmp.lt.s32.totalorder %s17_s13, %s17_s13 }
   0x5   :  { %p226_p0 = scmp.ne.s32.totalorder %s17_s13, %s225_s14  ;;  %p231_p2 = scmp.lt.s32.totalorder %s225_s14, %s225_s14 }
   0x7   :  { %p232_p3 = por %p231_p2, %p230_p1 }
   0x9   :  { %p233_p4 = pnand %p232_p3, %p226_p0 }
   0xb   :  { %236 = shalt.err (!%p233_p4)
}
   0xc   :  { %s284_s15 = smov 128   ;;  %s285_s16 = smov 8  }
   0xd   :  { %22 = dma.hbm_to_vmem [thread:$0]  %s333_s0, 256, %s17_s13, [#allocation3], %s284_s15, %s284_s15, %s285_s16  }
   0xe   :  { %s286_s19 = smov [#allocation5]  }
   0xf   :  { %s28_s20 = sshll.u32 %s286_s19, 4  ;;  %s29_s20 = int_to_ptr.vmem [resolvable:$true] %s28_s20 }
  0x10   :  { %s245_s21 = scalar_lea.vmem %s29_s20, 1024  ;;  %p250_p6 = scmp.lt.s32.totalorder %s29_s20, %s29_s20 }
  0x11   :  { %p246_p5 = scmp.ne.s32.totalorder %s29_s20, %s245_s21  ;;  %p251_p7 = scmp.lt.s32.totalorder %s245_s21, %s245_s21 }
  0x13   :  { %p252_p8 = por %p251_p7, %p250_p6 }
  0x15   :  { %p253_p9 = pnand %p252_p8, %p246_p5 }
  0x17   :  { %256 = shalt.err (!%p253_p9)
}
  0x18   :  { %s287_s22 = smov 256   ;;  %s288_s23 = smov 16  }
  0x19   :  { %34 = dma.hbm_to_vmem [thread:$0]  %s334_s1, 1024, %s29_s20, [#allocation6], %s287_s22, %s287_s22, %s288_s23  }
  0x1a   :  { %277 = dma.done.wait [#allocation3], 256  }
  0x1b   :  { %278 = vsyncadd [#allocation3], 4294967040 }
  0x1c   :  { %279 = dma.done.wait [#allocation6], 1024  }
  0x1d   :  { %280 = vsyncadd [#allocation6], 4294966272  ;;  %v289_v0 = vmov 0.0   ;;  %v52_v1 = vld [vmem:[#allocation5 + $0x38] sm:$0xff]  ;;  %v51_v2 = vld [vmem:[#allocation5 + $0x30] sm:$0xff]  ;;  %vm65_vm0 = vcmask 261120   ;;  %v55_v11 = vlaneseq }
  0x1e   :  { %136 = vmatprep.mubr.f32.mxu0 %v289_v0  ;;  %142 = vmatprep.mubr.f32.mxu1 %v289_v0  ;;  %v50_v3 = vld [vmem:[#allocation5 + $0x28] sm:$0xff]  ;;  %v49_v4 = vld [vmem:[#allocation5 + $0x20] sm:$0xff]  ;;  %v48_v5 = vld [vmem:[#allocation5 + $0x18] sm:$0xff] }
  0x1f   :  { %96 = vmatprep.subr.mxu0 %v52_v1  ;;  %193 = vmatprep.subr.mxu1 %v52_v1  ;;  %v47_v6 = vld [vmem:[#allocation5 + $0x10] sm:$0xff]  ;;  %v46_v7 = vld [vmem:[#allocation5 + $0x8] sm:$0xff]  ;;  %v45_v8 = vld [vmem:[#allocation5] sm:$0xff]  ;;  %v56_v12 = vshrl.u32 %v55_v11, 7 }
  0x20   :  { %97 = vmatpush1.msra.mxu0 %v51_v2  ;;  %197 = vmatpush1.msra.mxu1 %v51_v2  ;;  %v43_v9 = vld [vmem:[#allocation2] sm:$0xff]  ;;  %v44_v10 = vld [vmem:[#allocation2 + $0x8] sm:$0xff] }
  0x21   :  { %98 = vmatprep.subr.mxu0 %v50_v3  ;;  %194 = vmatprep.subr.mxu1 %v50_v3  ;;  %v61_v13 = vsub.s32 1, %v56_v12  ;;  %v53_v14 = vld [vmem:[%s335_s2] sm:$0x3]  ;;  %v57_v24 = vsub.s32 0, %v56_v12  ;;  %s290_s2 = smov [#allocation7]  }
  0x22   :  { %99 = vmatpush1.msra.mxu0 %v49_v4  ;;  %198 = vmatpush1.msra.mxu1 %v49_v4  ;;  %s176_s26 = sshll.u32 %s290_s2, 4  ;;  %s177_s26 = int_to_ptr.vmem [resolvable:$true] %s176_s26 }
  0x23   :  { %100 = vmatprep.subr.mxu0 %v48_v5  ;;  %195 = vmatprep.subr.mxu1 %v48_v5  ;;  %v62_v15 = vrot.slane %v53_v14, %v61_v13  ;;  %v58_v29 = vrot.slane %v53_v14, %v57_v24  ;;  %s257_s27 = scalar_lea.vmem %s177_s26, 256  ;;  %p262_p11 = scmp.lt.s32.totalorder %s177_s26, %s177_s26 }
  0x24   :  { %101 = vmatpush1.msra.mxu0 %v47_v6  ;;  %199 = vmatpush1.msra.mxu1 %v47_v6  ;;  %p258_p10 = scmp.ne.s32.totalorder %s177_s26, %s257_s27  ;;  %p263_p12 = scmp.lt.s32.totalorder %s257_s27, %s257_s27 }
  0x25   :  { %102 = vmatprep.subr.mxu0 %v46_v7  ;;  %196 = vmatprep.subr.mxu1 %v46_v7 }
  0x26   :  { %103 = vmatpush1.msra.mxu0 %v45_v8  ;;  %200 = vmatpush1.msra.mxu1 %v45_v8  ;;  %p264_p13 = por %p263_p12, %p262_p11 }
  0x27   :  { %189 = vmatmul.mubr.msk.f32.vlgmr.msra.gmra.mxu0 %vm65_vm0, %v43_v9  ;;  %190 = vmatmul.mubr.msk.f32.vlgmr.msra.gmra.mxu1 %vm65_vm0, %v44_v10 }
  0x28   :  { %p265_p0 = pnand %p264_p13, %p258_p10 }
  0xe7   :  { %v138_v16 = vpop.f32.mrf.mxu0  ;;  %v144_v17 = vpop.f32.mrf.mxu1 }
  0xe8   :  { %v139_v30 = vadd.f32 %v138_v16, %v58_v29  ;;  %v145_v31 = vadd.f32 %v144_v17, %v58_v29 }
  0xe9   :  { %v140_v18 = vpop.f32.mrf.mxu0  ;;  %v146_v19 = vpop.f32.mrf.mxu1 }
  0xea   :  { %v141_v20 = vadd.f32 %v140_v18, %v62_v15  ;;  %v147_v21 = vadd.f32 %v146_v19, %v62_v15  ;;  %v149_v32 = vmax.f32 %v139_v30, 0.0  ;;  %v150_v33 = vmax.f32 %v145_v31, 0.0 }
  0xec   :  { %v191_v22 = vmul.f32 -1.442695, %v141_v20  ;;  %v192_v23 = vmul.f32 -1.442695, %v147_v21  ;;  %v163_v34 = vsub.f32 %v149_v32, %v43_v9  ;;  %v164_v36 = vsub.f32 %v150_v33, %v44_v10 }
  0xee   :  { %209 = vpow2.f32 %v191_v22 }
  0xef   :  { %211 = vpow2.f32 %v192_v23 }
  0xfb   :  { %v210_v25 = vpop.eup %209 }
  0xfc   :  { %v212_v26 = vpop.eup %211  ;;  %v157_v27 = vadd.f32 1.0, %v210_v25 }
  0xfd   :  { %v158_v28 = vadd.f32 1.0, %v212_v26 }
  0xfe   :  { %213 = vrcp.f32 %v157_v27 }
  0xff   :  { %215 = vrcp.f32 %v158_v28 }
 0x10b   :  { %v214_v35 = vpop.eup %213 }
 0x10c   :  { %v216_v37 = vpop.eup %215  ;;  %v165_v38 = vmul.f32 %v214_v35, %v163_v34 }
 0x10d   :  { %v166_v39 = vmul.f32 %v216_v37, %v164_v36 }
 0x10e   :  { %v167_v40 = vadd.f32 %v165_v38, %v43_v9 }
 0x10f   :  { %v168_v41 = vadd.f32 %v166_v39, %v44_v10 }
 0x110   :  { %169 = vst.msk [vmem:[#allocation7] sm:$0xff] %vm65_vm0, %v167_v40 }
 0x111   :  { %170 = vst.msk [vmem:[#allocation7 + $0x8] sm:$0xff] %vm65_vm0, %v168_v41 }
 0x112   :  { %268 = shalt.err (!%p265_p0)
}
 0x113   :  { %182 = dma.vmem_to_hbm [thread:$0]  %s177_s26, 256, %s336_s3, [#allocation4], %s284_s15, %s284_s15, %s285_s16  }
 0x114   :  { %281 = dma.done.wait [#allocation4], 256  }
 0x115   :  { %282 = vsyncadd [#allocation4], 4294967040 }
 0x116   :  { %186 = vsyncpa [#allocation3], 1 }
 0x117   :  { %187 = vsyncpa [#allocation6], 1 }
 0x118   :  { %188 = vsyncpa [#allocation4], 1 }

</bundles_post_ra>
